<compile_context>
chip_gen: v5e
topology: v5e:2x2
jax: 0.10.0
libtpu: 0.0.40
codegen_flags: <defaults>
</compile_context>

<pallas_src>
import functools

import jax
import jax.numpy as jnp
from jax import lax
from jax.experimental import pallas as pl
from jax.experimental.pallas import tpu as pltpu


def _qkv_proj_kernel(x_ref, wq_ref, wk_ref, wv_ref, q_ref, k_ref, v_ref):
    """One grid step == (one batch element, one row tile): fused QKV projection."""
    x = x_ref[0]                                                    # (Tr, D)
    q_ref[0] = jnp.dot(x, wq_ref[...],
                       preferred_element_type=jnp.float32).astype(q_ref.dtype)
    k_ref[0] = jnp.dot(x, wk_ref[...],
                       preferred_element_type=jnp.float32).astype(k_ref.dtype)
    v_ref[0] = jnp.dot(x, wv_ref[...],
                       preferred_element_type=jnp.float32).astype(v_ref.dtype)


def _attn_kernel(q_ref, k_ref, v_ref, wo_ref, bo_ref, o_ref, *,
                 heads, dim_head, n_real):
    """One grid step == (one batch element, one query-token tile)."""
    cdt = q_ref.dtype          # MXU operand dtype (bf16 or f32); accum stays f32

    q_all = q_ref[0]           # (Tq, inner)  -- softmax scale already folded into Wq
    k_all = k_ref[0]           # (Nk, inner)
    v_all = v_ref[0]           # (Nk, inner)
    nk = k_all.shape[0]

    head_outs = []
    for h in range(heads):     # heads is a small static constant -> unrolled, static slices
        sl = slice(h * dim_head, (h + 1) * dim_head)

        # q @ k^T without materializing a transpose (contract last dims).
        dots = lax.dot_general(q_all[:, sl], k_all[:, sl],
                               (((1,), (1,)), ((), ())),
                               preferred_element_type=jnp.float32)   # (Tq, Nk) f32

        if nk != n_real:       # sequence was padded -> mask padded key columns
            key_idx = lax.broadcasted_iota(jnp.int32, dots.shape, 1)
            dots = jnp.where(key_idx < n_real, dots, -1e30)

        # numerically-stable softmax, f32 math; approx reciprocal -> EUP slot.
        m = jnp.max(dots, axis=-1, keepdims=True)
        p = jnp.exp(dots - m)
        attn = p * pl.reciprocal(jnp.sum(p, axis=-1, keepdims=True), approx=True)

        head_outs.append(jnp.dot(attn.astype(cdt), v_all[:, sl],
                                 preferred_element_type=jnp.float32))  # (Tq, dh)

    # Single lane-dense output projection: (Tq, inner) @ (inner, D).
    # Contraction depth = inner (>= 128 for realistic configs) instead of dim_head.
    out_all = jnp.concatenate(head_outs, axis=-1).astype(cdt)          # (Tq, inner)
    acc = jnp.dot(out_all, wo_ref[...], preferred_element_type=jnp.float32)
    o_ref[0] = (acc + bo_ref[...].astype(jnp.float32)).astype(o_ref.dtype)


def _vmem_limit(requested, estimate_bytes):
    if requested is not None:
        return requested
    try:
        cap = pltpu.get_tpu_info().vmem_capacity_bytes
    except Exception:
        cap = 64 * 1024 * 1024          # conservative fallback (v7x physical)
    lim = max(int(estimate_bytes) * 3 // 2, 32 * 1024 * 1024)
    return int(min(lim, cap * 7 // 8))  # <=56 MiB on v7x, <=112 MiB on v5e/v6e


def attention_pallas(x, wq, wk, wv, wo, bo, *, heads, dim_head,
                     compute_dtype=jnp.bfloat16, q_tile=256,
                     vmem_limit_bytes=None):
    """x: (B, N, D); wq/wk/wv: (D, inner) head-major columns; wo: (inner, D); bo: (D,).

    Implements the project_out=True branch of the PyTorch module; dropout p=0.0
    is an identity and therefore omitted. compute_dtype controls the MXU
    operand dtype (bf16 default on all TPU generations -- the MXU is
    bf16-native); softmax and accumulations are f32 regardless. Note: bf16
    operands mean attn rows no longer sum to exactly 1 (standard flash-attn
    practice); pass compute_dtype=None for f32 operands.
    """
    B, N, D = x.shape
    inner = heads * dim_head
    out_dtype = x.dtype
    cdt = jnp.dtype(out_dtype if compute_dtype is None else compute_dtype)

    # Fold the softmax scale into Wq once (O(D*inner), not per tile / per head).
    wq = wq.astype(jnp.float32) * (dim_head ** -0.5)

    # Query-token tiling; pad the sequence so every tile is full (keeps the
    # second parallel grid axis and lane/sublane-dense blocks even for ViT-style
    # N = 197 / 577). Padded key columns are masked inside the kernel.
    if N <= q_tile:
        tile_n, n_pad = N, N
    else:
        tile_n = q_tile
        n_pad = pl.cdiv(N, tile_n) * tile_n
        if n_pad != N:
            x = jnp.pad(x, ((0, 0), (0, n_pad - N), (0, 0)))
    qt = n_pad // tile_n

    x = x.astype(cdt)
    wq = wq.astype(cdt)
    wk = wk.astype(cdt)
    wv = wv.astype(cdt)
    wo = wo.astype(cdt)
    bo2 = bo.reshape(1, D).astype(jnp.float32)     # bias added in f32

    # Explicit scoped-VMEM budget from the real working set (+50% headroom).
    cs = cdt.itemsize
    ob = jnp.dtype(out_dtype).itemsize
    est = (2 * tile_n * D * cs                      # x / q row tiles (double buffered)
           + 2 * 2 * n_pad * inner * cs             # K, V whole-sequence blocks
           + 2 * tile_n * inner * cs                # q tile
           + (3 * D * inner + inner * D) * cs + 4 * D   # single-buffered weights + bias
           + 2 * tile_n * D * ob                    # output tile
           + 3 * tile_n * n_pad * 4                 # logits / softmax temporaries
           + tile_n * inner * 4 + tile_n * D * 4)   # head concat + out-proj accumulator
    vmem_limit = _vmem_limit(vmem_limit_bytes, est)

    cp = pltpu.CompilerParams(dimension_semantics=("parallel", "parallel"),
                              vmem_limit_bytes=vmem_limit)
    w_buf = dict(pipeline_mode=pl.Buffered(1))      # grid-invariant blocks: single-buffer

    # ---- 1) fused QKV projection (done once; never recomputed per query tile) ----
    q, k, v = pl.pallas_call(
        _qkv_proj_kernel,
        out_shape=(jax.ShapeDtypeStruct((B, n_pad, inner), cdt),
                   jax.ShapeDtypeStruct((B, n_pad, inner), cdt),
                   jax.ShapeDtypeStruct((B, n_pad, inner), cdt)),
        grid_spec=pltpu.PrefetchScalarGridSpec(
            num_scalar_prefetch=0,
            grid=(B, qt),
            in_specs=[
                pl.BlockSpec((1, tile_n, D), lambda b, i: (b, i, 0)),       # x rows
                pl.BlockSpec((D, inner), lambda b, i: (0, 0), **w_buf),     # Wq (scaled)
                pl.BlockSpec((D, inner), lambda b, i: (0, 0), **w_buf),     # Wk
                pl.BlockSpec((D, inner), lambda b, i: (0, 0), **w_buf),     # Wv
            ],
            out_specs=[
                pl.BlockSpec((1, tile_n, inner), lambda b, i: (b, i, 0)),
                pl.BlockSpec((1, tile_n, inner), lambda b, i: (b, i, 0)),
                pl.BlockSpec((1, tile_n, inner), lambda b, i: (b, i, 0)),
            ],
        ),
        compiler_params=cp,
    )(x, wq, wk, wv)

    # ---- 2) attention + output projection ----
    kernel = functools.partial(_attn_kernel, heads=heads, dim_head=dim_head,
                               n_real=N)
    out = pl.pallas_call(
        kernel,
        out_shape=jax.ShapeDtypeStruct((B, n_pad, D), out_dtype),
        grid_spec=pltpu.PrefetchScalarGridSpec(
            num_scalar_prefetch=0,
            grid=(B, qt),
            in_specs=[
                pl.BlockSpec((1, tile_n, inner), lambda b, qi: (b, qi, 0)),   # q rows
                pl.BlockSpec((1, n_pad, inner), lambda b, qi: (b, 0, 0)),     # K (whole seq)
                pl.BlockSpec((1, n_pad, inner), lambda b, qi: (b, 0, 0)),     # V (whole seq)
                pl.BlockSpec((inner, D), lambda b, qi: (0, 0), **w_buf),      # Wo
                pl.BlockSpec((1, D), lambda b, qi: (0, 0), **w_buf),          # bo
            ],
            out_specs=pl.BlockSpec((1, tile_n, D), lambda b, qi: (b, qi, 0)),
        ),
        compiler_params=cp,
    )(q, k, v, wo, bo2)

    if n_pad != N:
        out = out[:, :N, :]
    return out


def attention_reference(x, wq, wk, wv, wo, bo, *, heads, dim_head):
    """Plain-JAX reference of the PyTorch forward pass for validation."""
    B, N, D = x.shape
    inner = heads * dim_head
    scale = dim_head ** (-0.5)

    def split(t):  # (B, N, inner) -> (B, H, N, dh)   ('b n (h d) -> b h n d')
        return t.reshape(B, N, heads, dim_head).transpose(0, 2, 1, 3)

    q, k, v = split(x @ wq), split(x @ wk), split(x @ wv)
    dots = jnp.einsum('bhqd,bhkd->bhqk', q, k) * scale
    attn = jax.nn.softmax(dots, axis=-1)
    out = jnp.einsum('bhqk,bhkd->bhqd', attn, v)
    out = out.transpose(0, 2, 1, 3).reshape(B, N, inner)    # 'b h n d -> b n (h d)'
    return out @ wo + bo


if __name__ == "__main__":
    # small, module-consistent shapes
    B, N, D = 2, 8, 32          # batch, tokens, embed dim
    heads, dim_head = 4, 16     # inner_dim = 64, project_out = True
    inner = heads * dim_head

    key = jax.random.PRNGKey(0)
    kx, kq, kk, kv, ko, kb = jax.random.split(key, 6)

    x = jax.random.normal(kx, (B, N, D), dtype=jnp.float32)

    # deterministic synthetic parameters (stand-in for nn.Linear weights)
    wq = jax.random.normal(kq, (D, inner), dtype=jnp.float32) * 0.05
    wk = jax.random.normal(kk, (D, inner), dtype=jnp.float32) * 0.05
    wv = jax.random.normal(kv, (D, inner), dtype=jnp.float32) * 0.05
    wo = jax.random.normal(ko, (inner, D), dtype=jnp.float32) * 0.05
    bo = jax.random.normal(kb, (D,), dtype=jnp.float32) * 0.05

    y_ref = attention_reference(x, wq, wk, wv, wo, bo,
                                heads=heads, dim_head=dim_head)

    # f32 MXU operands (exactness check only; bf16 below is the perf path on
    # ALL generations -- v5e/v6e/v7x MXUs are bf16-native, f32 is multi-pass).
    y_f32 = attention_pallas(x, wq, wk, wv, wo, bo, heads=heads,
                             dim_head=dim_head, compute_dtype=None)
    y_f32 = jax.block_until_ready(y_f32)
    assert jnp.allclose(y_f32, y_ref, atol=5e-3, rtol=5e-3), "f32 mismatch vs reference"

    # default path: bf16 MXU operands; softmax + accumulation stay f32 in-kernel.
    y_bf16 = attention_pallas(x, wq, wk, wv, wo, bo, heads=heads, dim_head=dim_head)
    y_bf16 = jax.block_until_ready(y_bf16)
    assert jnp.allclose(y_bf16, y_ref, atol=3e-2, rtol=3e-2), "bf16 mismatch vs reference"

    print("KERNEL_OK")
</pallas_src>

<mosaic_0001>
module attributes {stable_mosaic.version = 11 : i64} {
  func.func @_qkv_proj_kernel(%arg0: i32, %arg1: i32, %arg2: memref<1x8x32xf32, #tpu.memory_space<vmem>>, %arg3: memref<32x64xf32, #tpu.memory_space<vmem>>, %arg4: memref<32x64xf32, #tpu.memory_space<vmem>>, %arg5: memref<32x64xf32, #tpu.memory_space<vmem>>, %arg6: memref<1x8x64xf32, #tpu.memory_space<vmem>>, %arg7: memref<1x8x64xf32, #tpu.memory_space<vmem>>, %arg8: memref<1x8x64xf32, #tpu.memory_space<vmem>>) attributes {dimension_semantics = [#tpu.dimension_semantics<parallel>, #tpu.dimension_semantics<parallel>], iteration_bounds = array<i64: 2, 1>, scalar_prefetch = 0 : i64, scratch_operands = 0 : i64, tpu.core_type = #tpu.core_type<tc>, window_params = [{transform_indices = @transform_0, window_bounds = array<i64: 1, 8, 32>}, {pipeline_mode = #tpu.pipeline_mode<synchronous>, transform_indices = @transform_1, window_bounds = array<i64: 32, 64>}, {pipeline_mode = #tpu.pipeline_mode<synchronous>, transform_indices = @transform_2, window_bounds = array<i64: 32, 64>}, {pipeline_mode = #tpu.pipeline_mode<synchronous>, transform_indices = @transform_3, window_bounds = array<i64: 32, 64>}, {transform_indices = @transform_4, window_bounds = array<i64: 1, 8, 64>}, {transform_indices = @transform_5, window_bounds = array<i64: 1, 8, 64>}, {transform_indices = @transform_6, window_bounds = array<i64: 1, 8, 64>}]} {
    %c0 = arith.constant 0 : index
    %c0_0 = arith.constant 0 : index
    %c0_1 = arith.constant 0 : index
    %0 = vector.load %arg2[%c0, %c0_0, %c0_1] : memref<1x8x32xf32, #tpu.memory_space<vmem>>, vector<1x8x32xf32>
    %1 = vector.shape_cast %0 : vector<1x8x32xf32> to vector<8x32xf32>
    %c0_2 = arith.constant 0 : index
    %c0_3 = arith.constant 0 : index
    %2 = vector.load %arg3[%c0_2, %c0_3] : memref<32x64xf32, #tpu.memory_space<vmem>>, vector<32x64xf32>
    %cst = arith.constant dense<0.000000e+00> : vector<8x64xf32>
    %3 = tpu.matmul %1, %2, %cst {dimension_numbers = #tpu.dot_dimension_numbers<[1], [0], [0], [1], [0, 0, 1, 1], [], []>} : vector<8x32xf32>, vector<32x64xf32>, vector<8x64xf32> -> vector<8x64xf32>
    %c0_4 = arith.constant 0 : index
    %c0_5 = arith.constant 0 : index
    %c0_6 = arith.constant 0 : index
    %4 = vector.load %arg6[%c0_4, %c0_5, %c0_6] : memref<1x8x64xf32, #tpu.memory_space<vmem>>, vector<1x8x64xf32>
    %5 = vector.shape_cast %4 : vector<1x8x64xf32> to vector<8x64xf32>
    %6 = vector.shape_cast %3 : vector<8x64xf32> to vector<1x8x64xf32>
    tpu.vector_store %arg6[%c0_4, %c0_5, %c0_6], %6 {strides = array<i32>} : memref<1x8x64xf32, #tpu.memory_space<vmem>>, vector<1x8x64xf32>,
    %c0_7 = arith.constant 0 : index
    %c0_8 = arith.constant 0 : index
    %7 = vector.load %arg4[%c0_7, %c0_8] : memref<32x64xf32, #tpu.memory_space<vmem>>, vector<32x64xf32>
    %cst_9 = arith.constant dense<0.000000e+00> : vector<8x64xf32>
    %8 = tpu.matmul %1, %7, %cst_9 {dimension_numbers = #tpu.dot_dimension_numbers<[1], [0], [0], [1], [0, 0, 1, 1], [], []>} : vector<8x32xf32>, vector<32x64xf32>, vector<8x64xf32> -> vector<8x64xf32>
    %c0_10 = arith.constant 0 : index
    %c0_11 = arith.constant 0 : index
    %c0_12 = arith.constant 0 : index
    %9 = vector.load %arg7[%c0_10, %c0_11, %c0_12] : memref<1x8x64xf32, #tpu.memory_space<vmem>>, vector<1x8x64xf32>
    %10 = vector.shape_cast %9 : vector<1x8x64xf32> to vector<8x64xf32>
    %11 = vector.shape_cast %8 : vector<8x64xf32> to vector<1x8x64xf32>
    tpu.vector_store %arg7[%c0_10, %c0_11, %c0_12], %11 {strides = array<i32>} : memref<1x8x64xf32, #tpu.memory_space<vmem>>, vector<1x8x64xf32>,
    %c0_13 = arith.constant 0 : index
    %c0_14 = arith.constant 0 : index
    %12 = vector.load %arg5[%c0_13, %c0_14] : memref<32x64xf32, #tpu.memory_space<vmem>>, vector<32x64xf32>
    %cst_15 = arith.constant dense<0.000000e+00> : vector<8x64xf32>
    %13 = tpu.matmul %1, %12, %cst_15 {dimension_numbers = #tpu.dot_dimension_numbers<[1], [0], [0], [1], [0, 0, 1, 1], [], []>} : vector<8x32xf32>, vector<32x64xf32>, vector<8x64xf32> -> vector<8x64xf32>
    %c0_16 = arith.constant 0 : index
    %c0_17 = arith.constant 0 : index
    %c0_18 = arith.constant 0 : index
    %14 = vector.load %arg8[%c0_16, %c0_17, %c0_18] : memref<1x8x64xf32, #tpu.memory_space<vmem>>, vector<1x8x64xf32>
    %15 = vector.shape_cast %14 : vector<1x8x64xf32> to vector<8x64xf32>
    %16 = vector.shape_cast %13 : vector<8x64xf32> to vector<1x8x64xf32>
    tpu.vector_store %arg8[%c0_16, %c0_17, %c0_18], %16 {strides = array<i32>} : memref<1x8x64xf32, #tpu.memory_space<vmem>>, vector<1x8x64xf32>,
    return
  }
  func.func @transform_0(%arg0: i32, %arg1: i32) -> (i32, i32, i32) {
    %c0_i32 = arith.constant 0 : i32
    %c0_i32_0 = arith.constant 0 : i32
    return %arg0, %arg1, %c0_i32 : i32, i32, i32
  }
  func.func @transform_1(%arg0: i32, %arg1: i32) -> (i32, i32) {
    %c0_i32 = arith.constant 0 : i32
    %c0_i32_0 = arith.constant 0 : i32
    %c0_i32_1 = arith.constant 0 : i32
    return %c0_i32, %c0_i32_0 : i32, i32
  }
  func.func @transform_2(%arg0: i32, %arg1: i32) -> (i32, i32) {
    %c0_i32 = arith.constant 0 : i32
    %c0_i32_0 = arith.constant 0 : i32
    %c0_i32_1 = arith.constant 0 : i32
    return %c0_i32, %c0_i32_0 : i32, i32
  }
  func.func @transform_3(%arg0: i32, %arg1: i32) -> (i32, i32) {
    %c0_i32 = arith.constant 0 : i32
    %c0_i32_0 = arith.constant 0 : i32
    %c0_i32_1 = arith.constant 0 : i32
    return %c0_i32, %c0_i32_0 : i32, i32
  }
  func.func @transform_4(%arg0: i32, %arg1: i32) -> (i32, i32, i32) {
    %c0_i32 = arith.constant 0 : i32
    %c0_i32_0 = arith.constant 0 : i32
    return %arg0, %arg1, %c0_i32 : i32, i32, i32
  }
  func.func @transform_5(%arg0: i32, %arg1: i32) -> (i32, i32, i32) {
    %c0_i32 = arith.constant 0 : i32
    %c0_i32_0 = arith.constant 0 : i32
    return %arg0, %arg1, %c0_i32 : i32, i32, i32
  }
  func.func @transform_6(%arg0: i32, %arg1: i32) -> (i32, i32, i32) {
    %c0_i32 = arith.constant 0 : i32
    %c0_i32_0 = arith.constant 0 : i32
    return %arg0, %arg1, %c0_i32 : i32, i32, i32
  }
}

</mosaic_0001>

<bundles_post_ra>
// kernel: tpu_custom_call.1
= control target key start
LH: loop header
LB: loop body
LE: loop exit
PB: predicated region body
PF: predicated region fallthrough
CT: control target
= control target key end

     0   :  { %s1350_s0 = inlined_call_operand.hbm [shape: f32[2,8,32], index: 0, kind: input, shape index: {}]   ;;  %s1351_s1 = inlined_call_operand.hbm [shape: f32[32,64], index: 1, kind: input, shape index: {}]   ;;  %s1352_s2 = inlined_call_operand.hbm [shape: f32[32,64], index: 2, kind: input, shape index: {}]   ;;  %s1353_s3 = inlined_call_operand.hbm [shape: f32[32,64], index: 3, kind: input, shape index: {}]   ;;  %s1354_s4 = inlined_call_operand.hbm [shape: f32[2,8,64], index: 4, kind: output, shape index: {0}]   ;;  %s1355_s5 = inlined_call_operand.hbm [shape: f32[2,8,64], index: 5, kind: output, shape index: {1}]   ;;  %s1356_s6 = inlined_call_operand.hbm [shape: f32[2,8,64], index: 6, kind: output, shape index: {2}]  }
   0x1   :  { %1362 = sst [smem:[#allocation21_spill]] %s1350_s0 }
   0x2   :  { %1363 = sst [smem:[#allocation22_spill]] %s1351_s1 }
   0x3   :  { %1364 = sst [smem:[#allocation23_spill]] %s1352_s2 }
   0x4   :  { %12 = vsyncpa [#allocation3], 0 }
   0x5   :  { %14 = vsyncpa [#allocation3 + $0x1], 0 }
   0x6   :  { %15 = vsyncpa [#allocation6], 0 }
   0x7   :  { %16 = vsyncpa [#allocation9], 0 }
   0x8   :  { %17 = vsyncpa [#allocation4], 0 }
   0x9   :  { %19 = vsyncpa [#allocation4 + $0x1], 0 }
   0xa   :  { %20 = vsyncpa [#allocation12], 0 }
   0xb   :  { %22 = vsyncpa [#allocation12 + $0x1], 0  ;;  %s1115_s21 = smov 0   ;;  %s1117_s22 = smov 0  }
   0xc   :  { %s1119_s23 = smov 0   ;;  %s1121_s24 = smov 0  }
   0xd   :  { %s1123_s25 = smov 0   ;;  %s1125_s26 = smov 0  }
   0xe LB: > { %s1146_s27 = sadd.s32 4294967295, %s1073_s26   ;;  %p672_p0 = scmp.ge.s32.totalorder %s1073_s26, 1  ;;  %s1073_s26 = sphi %s1125_s26, %s28_s26   ;;  %s1069_s25 = sphi %s1123_s25, %s1387_s25   ;;  %s1065_s24 = sphi %s1121_s24, %s1386_s24   ;;  %s1061_s23 = sphi %s1119_s23, %s1385_s23   ;;  %s1057_s22 = sphi %s1117_s22, %s1384_s22   ;;  %s1053_s21 = sphi %s1115_s21, %s1383_s21  }
   0xf   : > { %p63_p1 = scmp.eq.s32.totalorder %s1146_s27, 0  ;;  %p220_p2 = scmp.lt.s32.totalorder %s1073_s26, 3 }
  0x10   : > { %s1365_s1 = sld [smem:[#allocation22_spill]]  ;;  %s1075_s8 = smov [#allocation5]  }
  0x11   : > { %p1154_p3 = pnand %p672_p0, %p220_p2  ;;  %s233_s9 = sshll.u32 %s1075_s8, 4  ;;  %s234_s9 = int_to_ptr.vmem [resolvable:$true] %s233_s9 }
  0x12   : > { %p676_p6 = scmp.ge.s32.totalorder %s1073_s26, 2  ;;  %s1368_s2 = sld [smem:[#allocation23_spill]] }
  0x13   : > { %p718_p4 = pneg %p1154_p3  ;;  %s1076_s14 = smov 128  }
  0x14   : > { %s1077_s15 = smov 8   ;;  %s1078_s16 = smov [#allocation7]  }
  0x15   : > { %p1162_p5 = pnand %p718_p4, %p63_p1  ;;  %s247_s17 = sshll.u32 %s1078_s16, 4  ;;  %s248_s17 = int_to_ptr.vmem [resolvable:$true] %s247_s17 }
  0x16   : > { %s231_s30 = sshll.u32 %s1365_s1, 4  ;;  %s259_s20 = sshll.u32 %s1353_s3, 4  ;;  %s232_s30 = int_to_ptr.hbm [resolvable:$true] %s231_s30  ;;  %s260_s20 = int_to_ptr.hbm [resolvable:$true] %s259_s20 }
  0x17   : > { %721 = dma.hbm_to_vmem [thread:$0]  (!%p1162_p5), %s232_s30, 512, %s234_s9, [#allocation6], %s1076_s14, %s1076_s14, %s1077_s15  }
  0x18   : > { %s245_s13 = sshll.u32 %s1368_s2, 4  ;;  %s1079_s28 = smov [#allocation8]   ;;  %s246_s13 = int_to_ptr.hbm [resolvable:$true] %s245_s13 }
  0x19   : > { %724 = dma.hbm_to_vmem [thread:$0]  (!%p1162_p5), %s246_s13, 512, %s248_s17, [#allocation6], %s1076_s14, %s1076_s14, %s1077_s15  }
  0x1a   : > { %s261_s29 = sshll.u32 %s1079_s28, 4  ;;  %s1357_s30 = sadd.s32 4294967294, %s1073_s26   ;;  %s262_s29 = int_to_ptr.vmem [resolvable:$true] %s261_s29 }
  0x1b   : > { %727 = dma.hbm_to_vmem [thread:$0]  (!%p1162_p5), %s260_s20, 512, %s262_s29, [#allocation9], %s1076_s14, %s1076_s14, %s1077_s15  }
  0x1c   : > { %s40_s8 = sadd.s32 1, %s1069_s25  ;;  %s49_s9 = sadd.s32 1, %s1061_s23 }
  0x1d   : > { %p42_p7 = scmp.ge.s32.totalorder %s40_s8, 2  ;;  %p56_p8 = scmp.ne.s32.totalorder %s1061_s23, %s1057_s22 }
  0x1e   : > { %p57_p9 = scmp.eq.s32.totalorder %s1073_s26, 0  ;;  %p62_p10 = scmp.ne.s32.totalorder %s1057_s22, %s1053_s21 }
  0x1f   : > { %s1389_s8 = smov (%p42_p7, %s40_s8), 0  ;;  %p151_p13 = scmp.eq.s32.totalorder %s1146_s27, 1 }
  0x20   : > { %p1189_p11 = por %p57_p9, %p56_p8  ;;  %p1195_p12 = por %p63_p1, %p62_p10 }
  0x21   : > { %s44_s12 = ssub.s32 %s1069_s25, %s1389_s8  ;;  %p157_p2 = scmp.eq.s32.totalorder %s1357_s30, 1 }
  0x22   : > { %p47_p0 = scmp.eq.s32.totalorder %s44_s12, 0  ;;  %p1204_p4 = por %p151_p13, %p56_p8 }
  0x23   : > { %p745_p5 = scmp.lt.s32.totalorder %s1073_s26, 2  ;;  %p1212_p7 = por %p157_p2, %p62_p10 }
  0x24   : > { %s1210_s14 = scalar_select %p47_p0, %s1061_s23, %s49_s9  }
  0x25   : > { %s275_s16 = sand.u32 1, %s1061_s23   ;;  %s678_s18 = sshll.u32 %s1069_s25, 3 }
  0x26   : > { %s677_s17 = sshll.u32 %s275_s16, 3  ;;  %s1373_s0 = sld [smem:[#allocation21_spill]] }
  0x27   : > { %s279_s29 = scalar_lea.vmem [#allocation2], %s677_s17  ;;  %p729_p8 = pnand %p745_p5, %p1189_p11 }
  0x28   : > { %s288_s12 = sshll.u32 %s279_s29, 4  ;;  %s276_s9 = scalar_lea.sflag [#allocation3], %s275_s16  ;;  %s289_s12 = int_to_ptr.vmem [resolvable:$true] %s288_s12 }
  0x2a   : > { %297 = sbr.rel (%p1154_p3) target bundleno = 225 (0xe1), region = 36 }
  0x2c   : > { %s284_s28 = scalar_lea.hbm %s1373_s0, %s678_s18 }
  0x2d   : > { %s286_s30 = sshll.u32 %s284_s28, 4  ;;  %s287_s30 = int_to_ptr.hbm [resolvable:$true] %s286_s30 }
  0x2e   : > { %731 = dma.hbm_to_vmem [thread:$0]  (!%p729_p8), %s287_s30, 128, %s289_s12, %s276_s9  }
  0x2f   : > { %s1226_s1 = sand.u32 1, %s1057_s22  }
  0x30   : > { %s1229_s19 = sshll.u32 %s1226_s1, 3  ;;  %s300_s17 = scalar_lea.sflag [#allocation3], %s1226_s1 }
  0x31   : > { %s303_s18 = scalar_lea.vmem [#allocation2], %s1229_s19 }
  0x32   : > { %1032 = dma.done.wait (%p1195_p12), %s300_s17, 128  }
  0x33   : > { %1034 = vsyncadd (%p1195_p12), %s300_s17, 4294967168 }
  0x34   : > { %1036 = dma.done.wait (%p63_p1), [#allocation6], 1024  }
  0x35   : > { %1038 = vsyncadd (%p63_p1), [#allocation6], 4294966272 }
  0x36   : > { %1040 = dma.done.wait (%p63_p1), [#allocation9], 512  }
  0x37   : > { %1042 = vsyncadd (%p63_p1), [#allocation9], 4294966784  ;;  %v417_v0 = vld [vmem:[#allocation8 + $0x18] sm:$0xff]  ;;  %v416_v1 = vld [vmem:[#allocation8 + $0x10] sm:$0xff]  ;;  %vm363_vm0 = vcmask 261120   ;;  %s693_s7 = sshll.u32 %s1065_s24, 3 }
  0x38   : > { %430 = vmatpush.msra.mxu2 %v417_v0  ;;  %v392_v2 = vld [vmem:[#allocation7 + $0x18] sm:$0xff]  ;;  %v415_v4 = vld [vmem:[#allocation8 + $0x8] sm:$0xff]  ;;  %v391_v5 = vld [vmem:[#allocation7 + $0x10] sm:$0xff]  ;;  %s444_s30 = sand.u32 1, %s1146_s27   ;;  %s476_s16 = scalar_lea.hbm %s1355_s5, %s693_s7  ;;  %vm387_vm1 = vcmask 523264  }
  0x39   : > { %v362_v3 = vld [vmem:[#allocation5 + $0x18] sm:$0xff]  ;;  %405 = vmatpush.msra.mxu1 %v392_v2  ;;  %v361_v6 = vld [vmem:[#allocation5 + $0x10] sm:$0xff]  ;;  %v390_v7 = vld [vmem:[#allocation7 + $0x8] sm:$0xff]  ;;  %s461_s29 = scalar_lea.hbm %s1354_s4, %s693_s7  ;;  %s350_s12 = scalar_lea.vmem [#allocation11], %s1229_s19 }
  0x3a   : > { %379 = vmatpush.msra.mxu0 %v362_v3  ;;  %431 = vmatpush.msra.mxu2 %v416_v1  ;;  %v360_v8 = vld [vmem:[#allocation5 + $0x8] sm:$0xff]  ;;  %v414_v9 = vld [vmem:[#allocation8] sm:$0xff]  ;;  %v358_v10 = vld [vmem:[%s303_s18] sm:$0xff]  ;;  %s1254_s9 = sshll.u32 %s350_s12, 4  ;;  %s1256_s17 = sshll.u32 %s476_s16, 4  ;;  %s479_s9 = int_to_ptr.vmem [resolvable:$true] %s1254_s9  ;;  %s481_s17 = int_to_ptr.hbm [resolvable:$true] %s1256_s17 }
  0x3b   : > { %406 = vmatpush.msra.mxu1 %v391_v5  ;;  %v389_v11 = vld [vmem:[#allocation7] sm:$0xff]  ;;  %s343_s18 = scalar_lea.vmem [#allocation10], %s1229_s19  ;;  %s1261_s27 = sshll.u32 %s461_s29, 4 }
  0x3c   : > { %380 = vmatpush.msra.mxu0 %v361_v6  ;;  %432 = vmatpush.msra.mxu2 %v415_v4  ;;  %v359_v12 = vld [vmem:[#allocation5] sm:$0xff]  ;;  %s1259_s24 = sshll.u32 %s343_s18, 4  ;;  %1375 = sst [smem:[#allocation20_spill]] %s1261_s27 }
  0x3d   : > { %407 = vmatpush.msra.mxu1 %v390_v7  ;;  %1374 = sst [smem:[#allocation19_spill]] %s1259_s24  ;;  %s491_s20 = scalar_lea.hbm %s1356_s6, %s693_s7 }
  0x3e   : > { %381 = vmatpush.msra.mxu0 %v360_v8  ;;  %433 = vmatpush.msra.mxu2 %v414_v9  ;;  %s1361_s16 = scalar_lea.vmem [#allocation13], %s1229_s19  ;;  %s1276_s29 = sshll.u32 %s491_s20, 4  ;;  %s496_s29 = int_to_ptr.hbm [resolvable:$true] %s1276_s29 }
  0x3f   : > { %689 = vmatmul.msk.f32.vlgmr.msra.gmra.mxu2 %vm363_vm0, %v358_v10  ;;  %408 = vmatpush.msra.mxu1 %v389_v11  ;;  %s1274_s28 = sshll.u32 %s1361_s16, 4  ;;  %s1279_s0 = scalar_lea.sflag [#allocation12], %s444_s30  ;;  %s494_s28 = int_to_ptr.vmem [resolvable:$true] %s1274_s28 }
  0x40   : > { %382 = vmatpush.msra.mxu0 %v359_v12  ;;  %688 = vmatmul.msk.f32.vlgmr.msra.gmra.mxu1 %vm363_vm0, %v358_v10  ;;  %s937_s11 = sshra.s32 %s481_s17, 4  ;;  %s943_s24 = scalar_lea.hbm %s1355_s5, 16  ;;  %s938_s11 = int_to_ptr.hbm [resolvable:$true] %s937_s11 }
  0x41   : > { %687 = vmatmul.msk.f32.vlgmr.msra.gmra.mxu0 %vm363_vm0, %v358_v10  ;;  %s939_s7 = scalar_lea.hbm %s938_s11, 8  ;;  %p944_p10 = scmp.lt.s32.totalorder %s938_s11, %s1355_s5 }
  0x42   : > { %p940_p1 = scmp.ne.s32.totalorder %s938_s11, %s939_s7  ;;  %p945_p11 = scmp.lt.s32.totalorder %s943_s24, %s939_s7 }
  0x44   : > { %p941_p3 = pnand %p940_p1, %p1204_p4  ;;  %p946_p12 = por %p945_p11, %p944_p10 }
  0x46   : > { %p942_p9 = pneg %p941_p3 }
  0x48   : > { %p947_p13 = pnand %p946_p12, %p942_p9 }
  0xbd   : > { %v410_v13 = vpop.f32.mrf.mxu1 }
  0xbe   : > { %413 = vst.msk [vmem:[%s350_s12] sm:$0xff] %vm387_vm1, %v410_v13  ;;  %v384_v14 = vpop.f32.mrf.mxu0 }
  0xbf   : > { %388 = vst.msk [vmem:[%s343_s18] sm:$0xff] %vm387_vm1, %v384_v14 }
  0xc0   : > { %950 = shalt.err (!%p947_p13)
}
  0xc1   : > { %s1376_s30 = sld [smem:[#allocation20_spill]]  ;;  %s440_s18 = scalar_lea.sflag [#allocation4], %s1226_s1 }
  0xc2   : > { %713 = dma.vmem_to_hbm [thread:$0]  (%p1204_p4), %s479_s9, 128, %s481_s17, %s1279_s0  }
  0xc3   : > { %s971_s16 = scalar_lea.hbm %s1354_s4, 16 }
  0xc7   : > { %s1377_s20 = int_to_ptr.hbm [resolvable:$true] %s1376_s30 }
  0xc8   : > { %s965_s2 = sshra.s32 %s1377_s20, 4  ;;  %s966_s2 = int_to_ptr.hbm [resolvable:$true] %s965_s2 }
  0xc9   : > { %s967_s10 = scalar_lea.hbm %s966_s2, 8  ;;  %p972_p8 = scmp.lt.s32.totalorder %s966_s2, %s1354_s4 }
  0xca   : > { %p968_p0 = scmp.ne.s32.totalorder %s966_s2, %s967_s10  ;;  %p973_p1 = scmp.lt.s32.totalorder %s971_s16, %s967_s10 }
  0xcc   : > { %p969_p2 = pnand %p968_p0, %p1204_p4  ;;  %p974_p3 = por %p973_p1, %p972_p8 }
  0xce   : > { %p970_p5 = pneg %p969_p2 }
  0xd0   : > { %p975_p9 = pnand %p974_p3, %p970_p5 }
  0xd2   : > { %978 = shalt.err (!%p975_p9)
}
  0xd3   : > { %s1378_s1 = smov %s1377_s20  ;;  %s1379_s9 = sld [smem:[#allocation19_spill]]  ;;  %v435_v15 = vpop.f32.mrf.mxu2 }
  0xd4   : > { %s1381_s2 = scalar_lea.vmem [#allocation13], %s1229_s19  ;;  %s993_s12 = sshra.s32 %s496_s29, 4  ;;  %s994_s12 = int_to_ptr.hbm [resolvable:$true] %s993_s12 }
  0xd5   : > { %438 = vst.msk [vmem:[%s1381_s2] sm:$0xff] %vm387_vm1, %v435_v15  ;;  %s995_s20 = scalar_lea.hbm %s994_s12, 8  ;;  %s999_s24 = scalar_lea.hbm %s1356_s6, 16 }
  0xd6   : > { %p996_p10 = scmp.ne.s32.totalorder %s994_s12, %s995_s20  ;;  %p1000_p13 = scmp.lt.s32.totalorder %s994_s12, %s1356_s6 }
  0xd7   : > { %p1001_p0 = scmp.lt.s32.totalorder %s999_s24, %s995_s20 }
  0xd8   : > { %p997_p11 = pnand %p996_p10, %p1204_p4 }
  0xd9   : > { %s1380_s17 = int_to_ptr.vmem [resolvable:$true] %s1379_s9  ;;  %p1002_p2 = por %p1001_p0, %p1000_p13 }
  0xda   : > { %712 = dma.vmem_to_hbm [thread:$0]  (%p1204_p4), %s1380_s17, 128, %s1378_s1, %s440_s18  }
  0xdb   : > { %p998_p12 = pneg %p997_p11 }
  0xdd   : > { %p1003_p5 = pnand %p1002_p2, %p998_p12 }
  0xdf   : > { %1006 = shalt.err (!%p1003_p5)
}
  0xe0   : > { %714 = dma.vmem_to_hbm [thread:$0]  (%p1204_p4), %s494_s28, 128, %s496_s29, %s1279_s0  }
  0xe1 PF: > { %s507_s19 = sand.u32 1, %s1053_s21   ;;  %p733_p8 = pnand %p676_p6, %p1212_p7 }
  0xe2   : > { %s508_s18 = scalar_lea.sflag [#allocation4], %s507_s19 }
  0xe3   : > { %p734_p1 = pneg %p733_p8 }
  0xe5   : > { %1044 = dma.done.wait (%p734_p1), %s508_s18, 128  }
  0xe6   : > { %1046 = vsyncadd (%p734_p1), %s508_s18, 4294967168  ;;  %s1382_s11 = sadd.s32 4294967294, %s1073_s26  }
  0xe7   : > { %s517_s7 = sand.u32 1, %s1382_s11  }
  0xe8   : > { %s518_s1 = scalar_lea.sflag [#allocation12], %s517_s7 }
  0xe9   : > { %1048 = dma.done.wait (%p734_p1), %s518_s1, 256  }
  0xea   : > { %1050 = vsyncadd (%p734_p1), %s518_s1, 4294967040  ;;  %s28_s26 = sadd.s32 1, %s1073_s26   ;;  %s1383_s21 = smov %s1057_s22 }
  0xeb   : > { %p25_p4 = scmp.ge.s32.totalorder %s28_s26, 4   ;;  %s1384_s22 = smov %s1061_s23 }
  0xec   : > { %s1385_s23 = smov %s1210_s14  ;;  %s1386_s24 = smov %s1069_s25 }
  0xed   : > { %s1387_s25 = smov %s1389_s8  ;;  %27 = sbr.rel (!%p25_p4) target bundleno = 14 (0xe), region = 125 }
  0xf2   :  { %534 = vsyncpa [#allocation3], 1 }
  0xf3   :  { %536 = vsyncpa [#allocation3 + $0x1], 1 }
  0xf4   :  { %537 = vsyncpa [#allocation6], 1 }
  0xf5   :  { %538 = vsyncpa [#allocation9], 1 }
  0xf6   :  { %539 = vsyncpa [#allocation4], 1 }
  0xf7   :  { %541 = vsyncpa [#allocation4 + $0x1], 1 }
  0xf8   :  { %542 = vsyncpa [#allocation12], 1 }
  0xf9   :  { %544 = vsyncpa [#allocation12 + $0x1], 1 }

</bundles_post_ra>
